<compile_context>
chip_gen: v5e
topology: v5e:2x2
jax: 0.10.0
libtpu: 0.0.40
codegen_flags: <defaults>
</compile_context>

<pallas_src>
import jax
import jax.numpy as jnp
from jax.experimental import pallas as pl
from jax.experimental.pallas import tpu as pltpu

LANES = 128            # vreg lane width
MAX_SUBLANE_TILE = 64  # up to 64 * 128 = 8192 ids per grid step


def _rec_forward_kernel(idsc_ref, idsp_ref, cust_ref, prod_ref,
                        wc_ref, wp_ref, bias_ref, out_ref):
    # ---- per-row scores on the MXU (tables VMEM-resident across the grid) ---
    score_c = jnp.dot(cust_ref[...], wc_ref[...],
                      preferred_element_type=jnp.float32)       # (NC, 1)
    score_p = jnp.dot(prod_ref[...], wp_ref[...],
                      preferred_element_type=jnp.float32)       # (NP, 1)
    score_c = score_c + bias_ref[0, 0]                          # fold bias once

    # ---- gather + add over a full (TS, 128) id tile --------------------------
    ids_c = idsc_ref[...]                                       # (TS, 128) int32
    ids_p = idsp_ref[...]                                       # (TS, 128) int32
    nc = score_c.shape[0]
    npr = score_p.shape[0]
    ts, lanes = ids_c.shape

    # One-hot select + reduction over the table axis: exact in f32, no
    # data-dependent DMAs.  Cost is O((NC+NP) * TS * 128) VPU work, so this is
    # a small-table design (NC=64 / NP=48 here).
    # TODO(synk): for realistic table sizes (>= a few thousand rows) switch to
    # a scalar-prefetch / DMA gather of score entries instead of one-hot.
    row_c = jax.lax.broadcasted_iota(jnp.int32, (nc, ts, lanes), 0)
    row_p = jax.lax.broadcasted_iota(jnp.int32, (npr, ts, lanes), 0)
    g_c = jnp.sum(jnp.where(row_c == ids_c[None], score_c[:, :, None], 0.0),
                  axis=0)                                       # (TS, 128)
    g_p = jnp.sum(jnp.where(row_p == ids_p[None], score_p[:, :, None], 0.0),
                  axis=0)                                       # (TS, 128)
    out_ref[...] = g_c + g_p


def recommendation_forward(x_ids, cust_table, prod_table, fc_w, fc_b):
    """x_ids: (B, 2) int [customer_id, product_id]. Returns (B, 1) float32."""
    B = x_ids.shape[0]
    NC, D = cust_table.shape
    NP = prod_table.shape[0]

    # torch fc weight is (1, 2D): split into (D, 1) customer / product columns.
    wc = jnp.asarray(fc_w[:, :D], jnp.float32).T                # (D, 1)
    wp = jnp.asarray(fc_w[:, D:], jnp.float32).T                # (D, 1)
    bias = jnp.asarray(fc_b, jnp.float32).reshape(1, 1)         # SMEM scalar

    # ---- batch tiling: full (TS, 128) sublane+lane dense tiles ---------------
    rows = max(1, pl.cdiv(B, LANES))                            # 128-wide rows
    TS = min(MAX_SUBLANE_TILE, pl.cdiv(rows, 8) * 8)            # multiple of 8
    rows_pad = pl.cdiv(rows, TS) * TS
    B_pad = rows_pad * LANES
    grid = (rows_pad // TS,)

    ids = x_ids.astype(jnp.int32)
    pad = B_pad - B
    ids_c = jnp.pad(ids[:, 0], (0, pad)).reshape(rows_pad, LANES)
    ids_p = jnp.pad(ids[:, 1], (0, pad)).reshape(rows_pad, LANES)

    out2d = pl.pallas_call(
        _rec_forward_kernel,
        grid_spec=pltpu.PrefetchScalarGridSpec(
            num_scalar_prefetch=0,
            grid=grid,
            in_specs=[
                pl.BlockSpec((TS, LANES), lambda i: (i, 0)),     # customer ids
                pl.BlockSpec((TS, LANES), lambda i: (i, 0)),     # product ids
                pl.BlockSpec((NC, D), lambda i: (0, 0)),         # customer table
                pl.BlockSpec((NP, D), lambda i: (0, 0)),         # product table
                pl.BlockSpec((D, 1), lambda i: (0, 0)),          # Wc column
                pl.BlockSpec((D, 1), lambda i: (0, 0)),          # Wp column
                pl.BlockSpec(memory_space=pltpu.MemorySpace.SMEM),  # bias scalar
            ],
            out_specs=pl.BlockSpec((TS, LANES), lambda i: (i, 0)),
        ),
        out_shape=jax.ShapeDtypeStruct((rows_pad, LANES), jnp.float32),
        compiler_params=pltpu.CompilerParams(
            dimension_semantics=("parallel",),    # independent batch tiles
        ),
    )(ids_c, ids_p,
      cust_table.astype(jnp.float32), prod_table.astype(jnp.float32),
      wc, wp, bias)

    return out2d.reshape(-1)[:B].reshape(B, 1)


if __name__ == "__main__":
    num_customers, num_products, embed_dim, batch = 64, 48, 64, 16

    key = jax.random.PRNGKey(0)
    k1, k2, k3, k4, k5, k6 = jax.random.split(key, 6)

    # Deterministic synthetic parameters (shapes from the module's __init__).
    cust_table = jax.random.normal(k1, (num_customers, embed_dim), jnp.float32)
    prod_table = jax.random.normal(k2, (num_products, embed_dim), jnp.float32)
    bound = 1.0 / jnp.sqrt(2.0 * embed_dim)
    fc_w = jax.random.uniform(k3, (1, 2 * embed_dim), jnp.float32, -bound, bound)
    fc_b = jax.random.uniform(k4, (1,), jnp.float32, -bound, bound)

    # Example input: (B, 2) int32 [customer_id, product_id]
    cust_ids = jax.random.randint(k5, (batch,), 0, num_customers, dtype=jnp.int32)
    prod_ids = jax.random.randint(k6, (batch,), 0, num_products, dtype=jnp.int32)
    x = jnp.stack([cust_ids, prod_ids], axis=1)

    out = jax.block_until_ready(
        recommendation_forward(x, cust_table, prod_table, fc_w, fc_b))

    # Pure-JAX reference for correctness (mirrors the torch forward).
    feats = jnp.concatenate([cust_table[x[:, 0]], prod_table[x[:, 1]]], axis=1)
    ref = feats @ fc_w.T + fc_b
    assert out.shape == (batch, 1), out.shape
    assert jnp.allclose(out, ref, atol=1e-4, rtol=1e-4), (out, ref)

    print("KERNEL_OK")
</pallas_src>

<mosaic_0001>
module attributes {stable_mosaic.version = 11 : i64} {
  func.func @_rec_forward_kernel(%arg0: i32, %arg1: memref<8x128xi32, #tpu.memory_space<vmem>>, %arg2: memref<8x128xi32, #tpu.memory_space<vmem>>, %arg3: memref<64x64xf32, #tpu.memory_space<vmem>>, %arg4: memref<48x64xf32, #tpu.memory_space<vmem>>, %arg5: memref<64x1xf32, #tpu.memory_space<vmem>>, %arg6: memref<64x1xf32, #tpu.memory_space<vmem>>, %arg7: memref<1x1xf32, #tpu.memory_space<smem>>, %arg8: memref<8x128xf32, #tpu.memory_space<vmem>>) attributes {dimension_semantics = [#tpu.dimension_semantics<parallel>], iteration_bounds = array<i64: 1>, scalar_prefetch = 0 : i64, scratch_operands = 0 : i64, tpu.core_type = #tpu.core_type<tc>, window_params = [{transform_indices = @transform_0, window_bounds = array<i64: 8, 128>}, {transform_indices = @transform_1, window_bounds = array<i64: 8, 128>}, {pipeline_mode = #tpu.pipeline_mode<synchronous>, transform_indices = @transform_2, window_bounds = array<i64: 64, 64>}, {pipeline_mode = #tpu.pipeline_mode<synchronous>, transform_indices = @transform_3, window_bounds = array<i64: 48, 64>}, {pipeline_mode = #tpu.pipeline_mode<synchronous>, transform_indices = @transform_4, window_bounds = array<i64: 64, 1>}, {pipeline_mode = #tpu.pipeline_mode<synchronous>, transform_indices = @transform_5, window_bounds = array<i64: 64, 1>}, {transform_indices = @transform_6, window_bounds = array<i64: 1, 1>}, {transform_indices = @transform_7, window_bounds = array<i64: 8, 128>}]} {
    %c0 = arith.constant 0 : index
    %c0_0 = arith.constant 0 : index
    %0 = vector.load %arg3[%c0, %c0_0] : memref<64x64xf32, #tpu.memory_space<vmem>>, vector<64x64xf32>
    %c0_1 = arith.constant 0 : index
    %c0_2 = arith.constant 0 : index
    %1 = vector.load %arg5[%c0_1, %c0_2] : memref<64x1xf32, #tpu.memory_space<vmem>>, vector<64x1xf32>
    %cst = arith.constant dense<0.000000e+00> : vector<64x1xf32>
    %2 = tpu.matmul %0, %1, %cst {dimension_numbers = #tpu.dot_dimension_numbers<[1], [0], [0], [1], [0, 0, 1, 1], [], []>} : vector<64x64xf32>, vector<64x1xf32>, vector<64x1xf32> -> vector<64x1xf32>
    %c0_3 = arith.constant 0 : index
    %c0_4 = arith.constant 0 : index
    %3 = vector.load %arg4[%c0_3, %c0_4] : memref<48x64xf32, #tpu.memory_space<vmem>>, vector<48x64xf32>
    %c0_5 = arith.constant 0 : index
    %c0_6 = arith.constant 0 : index
    %4 = vector.load %arg6[%c0_5, %c0_6] : memref<64x1xf32, #tpu.memory_space<vmem>>, vector<64x1xf32>
    %cst_7 = arith.constant dense<0.000000e+00> : vector<48x1xf32>
    %5 = tpu.matmul %3, %4, %cst_7 {dimension_numbers = #tpu.dot_dimension_numbers<[1], [0], [0], [1], [0, 0, 1, 1], [], []>} : vector<48x64xf32>, vector<64x1xf32>, vector<48x1xf32> -> vector<48x1xf32>
    %c0_8 = arith.constant 0 : index
    %c0_9 = arith.constant 0 : index
    %6 = memref.load %arg7[%c0_8, %c0_9] : memref<1x1xf32, #tpu.memory_space<smem>>
    %7 = vector.broadcast %6 : f32 to vector<64x1xf32>
    %8 = arith.addf %2, %7 : vector<64x1xf32>
    %c0_10 = arith.constant 0 : index
    %c0_11 = arith.constant 0 : index
    %9 = vector.load %arg1[%c0_10, %c0_11] : memref<8x128xi32, #tpu.memory_space<vmem>>, vector<8x128xi32>
    %c0_12 = arith.constant 0 : index
    %c0_13 = arith.constant 0 : index
    %10 = vector.load %arg2[%c0_12, %c0_13] : memref<8x128xi32, #tpu.memory_space<vmem>>, vector<8x128xi32>
    %11 = tpu.iota {dimensions = array<i32: 0>} : vector<64x8x128xi32>
    %12 = tpu.iota {dimensions = array<i32: 0>} : vector<48x8x128xi32>
    %13 = vector.shape_cast %9 : vector<8x128xi32> to vector<1x8x128xi32>
    %14 = vector.broadcast %13 : vector<1x8x128xi32> to vector<64x8x128xi32>
    %15 = arith.cmpi eq, %11, %14 : vector<64x8x128xi32>
    %16 = vector.shape_cast %8 : vector<64x1xf32> to vector<64x1x1xf32>
    %cst_14 = arith.constant 0.000000e+00 : f32
    %17 = vector.shape_cast %16 : vector<64x1x1xf32> to vector<64x1x1xf32>
    %18 = vector.broadcast %17 : vector<64x1x1xf32> to vector<64x8x128xf32>
    %19 = vector.broadcast %cst_14 : f32 to vector<64x8x128xf32>
    %20 = arith.select %15, %18, %19 : vector<64x8x128xi1>, vector<64x8x128xf32>
    %cst_15 = arith.constant dense<0.000000e+00> : vector<8x128xf32>
    %21 = vector.multi_reduction <add>, %20, %cst_15 [0] : vector<64x8x128xf32> to vector<8x128xf32>
    %22 = vector.shape_cast %10 : vector<8x128xi32> to vector<1x8x128xi32>
    %23 = vector.broadcast %22 : vector<1x8x128xi32> to vector<48x8x128xi32>
    %24 = arith.cmpi eq, %12, %23 : vector<48x8x128xi32>
    %25 = vector.shape_cast %5 : vector<48x1xf32> to vector<48x1x1xf32>
    %cst_16 = arith.constant 0.000000e+00 : f32
    %26 = vector.shape_cast %25 : vector<48x1x1xf32> to vector<48x1x1xf32>
    %27 = vector.broadcast %26 : vector<48x1x1xf32> to vector<48x8x128xf32>
    %28 = vector.broadcast %cst_16 : f32 to vector<48x8x128xf32>
    %29 = arith.select %24, %27, %28 : vector<48x8x128xi1>, vector<48x8x128xf32>
    %cst_17 = arith.constant dense<0.000000e+00> : vector<8x128xf32>
    %30 = vector.multi_reduction <add>, %29, %cst_17 [0] : vector<48x8x128xf32> to vector<8x128xf32>
    %31 = arith.addf %21, %30 : vector<8x128xf32>
    %c0_18 = arith.constant 0 : index
    %c0_19 = arith.constant 0 : index
    %32 = vector.load %arg8[%c0_18, %c0_19] : memref<8x128xf32, #tpu.memory_space<vmem>>, vector<8x128xf32>
    tpu.vector_store %arg8[%c0_18, %c0_19], %31 {strides = array<i32>} : memref<8x128xf32, #tpu.memory_space<vmem>>, vector<8x128xf32>,
    return
  }
  func.func @transform_0(%arg0: i32) -> (i32, i32) {
    %c0_i32 = arith.constant 0 : i32
    %c0_i32_0 = arith.constant 0 : i32
    return %arg0, %c0_i32 : i32, i32
  }
  func.func @transform_1(%arg0: i32) -> (i32, i32) {
    %c0_i32 = arith.constant 0 : i32
    %c0_i32_0 = arith.constant 0 : i32
    return %arg0, %c0_i32 : i32, i32
  }
  func.func @transform_2(%arg0: i32) -> (i32, i32) {
    %c0_i32 = arith.constant 0 : i32
    %c0_i32_0 = arith.constant 0 : i32
    %c0_i32_1 = arith.constant 0 : i32
    return %c0_i32, %c0_i32_0 : i32, i32
  }
  func.func @transform_3(%arg0: i32) -> (i32, i32) {
    %c0_i32 = arith.constant 0 : i32
    %c0_i32_0 = arith.constant 0 : i32
    %c0_i32_1 = arith.constant 0 : i32
    return %c0_i32, %c0_i32_0 : i32, i32
  }
  func.func @transform_4(%arg0: i32) -> (i32, i32) {
    %c0_i32 = arith.constant 0 : i32
    %c0_i32_0 = arith.constant 0 : i32
    %c0_i32_1 = arith.constant 0 : i32
    return %c0_i32, %c0_i32_0 : i32, i32
  }
  func.func @transform_5(%arg0: i32) -> (i32, i32) {
    %c0_i32 = arith.constant 0 : i32
    %c0_i32_0 = arith.constant 0 : i32
    %c0_i32_1 = arith.constant 0 : i32
    return %c0_i32, %c0_i32_0 : i32, i32
  }
  func.func @transform_6(%arg0: i32) -> (i32, i32) {
    %c0_i32 = arith.constant 0 : i32
    %c0_i32_0 = arith.constant 0 : i32
    %c0_i32_1 = arith.constant 0 : i32
    return %c0_i32, %c0_i32_0 : i32, i32
  }
  func.func @transform_7(%arg0: i32) -> (i32, i32) {
    %c0_i32 = arith.constant 0 : i32
    %c0_i32_0 = arith.constant 0 : i32
    return %arg0, %c0_i32 : i32, i32
  }
}

</mosaic_0001>

<bundles_post_ra>
// kernel: tpu_custom_call.1
= control target key start
LH: loop header
LB: loop body
LE: loop exit
PB: predicated region body
PF: predicated region fallthrough
CT: control target
= control target key end

     0   :  { %s1750_s0 = inlined_call_operand.vmem [shape: s32[8,128], index: 0, kind: input, shape index: {}]   ;;  %s1751_s1 = inlined_call_operand.vmem [shape: s32[8,128], index: 1, kind: input, shape index: {}]   ;;  %s1752_s2 = inlined_call_operand.vmem [shape: f32[64,64], index: 2, kind: input, shape index: {}]   ;;  %s1753_s3 = inlined_call_operand.vmem [shape: f32[48,64], index: 3, kind: input, shape index: {}]   ;;  %s1754_s4 = inlined_call_operand.vmem [shape: f32[64,1], index: 4, kind: input, shape index: {}]   ;;  %s1755_s5 = inlined_call_operand.vmem [shape: f32[64,1], index: 5, kind: input, shape index: {}]   ;;  %s1756_s6 = inlined_call_operand.<no memory space> [shape: f32[1,1], index: 6, kind: input, shape index: {}]   ;;  %s1757_s7 = inlined_call_operand.hbm [shape: f32[8,128], index: 7, kind: output, shape index: {}]  }
   0x1   :  { %v57_v0 = vld [vmem:[%s1755_s5 + $0x38] sm:$0xff]  ;;  %v56_v2 = vld [vmem:[%s1755_s5 + $0x30] sm:$0xff]  ;;  %v55_v4 = vld [vmem:[%s1755_s5 + $0x28] sm:$0xff] }
   0x2   :  { %v43_v1 = vld [vmem:[%s1754_s4 + $0x38] sm:$0xff]  ;;  %85 = vmatpush.msra.mxu0 %v57_v0  ;;  %v42_v3 = vld [vmem:[%s1754_s4 + $0x30] sm:$0xff]  ;;  %v41_v5 = vld [vmem:[%s1754_s4 + $0x28] sm:$0xff]  ;;  %1219 = vmatpush.msra.mxu3 %v57_v0 }
   0x3   :  { %146 = vmatpush.msra.mxu1 %v43_v1  ;;  %1227 = vmatpush.msra.mxu2 %v43_v1  ;;  %v54_v6 = vld [vmem:[%s1755_s5 + $0x20] sm:$0xff]  ;;  %v53_v8 = vld [vmem:[%s1755_s5 + $0x18] sm:$0xff]  ;;  %v52_v10 = vld [vmem:[%s1755_s5 + $0x10] sm:$0xff] }
   0x4   :  { %86 = vmatpush.msra.mxu0 %v56_v2  ;;  %v40_v7 = vld [vmem:[%s1754_s4 + $0x20] sm:$0xff]  ;;  %1220 = vmatpush.msra.mxu3 %v56_v2  ;;  %v39_v9 = vld [vmem:[%s1754_s4 + $0x18] sm:$0xff]  ;;  %v38_v11 = vld [vmem:[%s1754_s4 + $0x10] sm:$0xff] }
   0x5   :  { %147 = vmatpush.msra.mxu1 %v42_v3  ;;  %1229 = vmatpush.msra.mxu2 %v42_v3 }
   0x6   :  { %87 = vmatpush.msra.mxu0 %v55_v4  ;;  %1221 = vmatpush.msra.mxu3 %v55_v4 }
   0x7   :  { %148 = vmatpush.msra.mxu1 %v41_v5  ;;  %1231 = vmatpush.msra.mxu2 %v41_v5 }
   0x8   :  { %88 = vmatpush.msra.mxu0 %v54_v6  ;;  %1222 = vmatpush.msra.mxu3 %v54_v6 }
   0x9   :  { %149 = vmatpush.msra.mxu1 %v40_v7  ;;  %1233 = vmatpush.msra.mxu2 %v40_v7 }
   0xa   :  { %13 = vsyncpa [#allocation4], 0  ;;  %89 = vmatpush.msra.mxu0 %v53_v8  ;;  %v51_v12 = vld [vmem:[%s1755_s5 + $0x8] sm:$0xff]  ;;  %1223 = vmatpush.msra.mxu3 %v53_v8  ;;  %v50_v14 = vld [vmem:[%s1755_s5] sm:$0xff]  ;;  %vm58_vm0 = vcmask 523264   ;;  %v1275_v26 = vmov 0   ;;  %v1412_v28 = vstv %s1756_s6 }
   0xb   :  { %150 = vmatpush.msra.mxu1 %v39_v9  ;;  %v37_v13 = vld [vmem:[%s1754_s4 + $0x8] sm:$0xff]  ;;  %1235 = vmatpush.msra.mxu2 %v39_v9  ;;  %v36_v15 = vld [vmem:[%s1754_s4] sm:$0xff]  ;;  %v31_v18 = vld [vmem:[%s1752_s2 + $0x18] sm:$0xff]  ;;  %s1196_s18 = sshll.u32 %s1757_s7, 4  ;;  %s1197_s18 = int_to_ptr.hbm [resolvable:$true] %s1196_s18 }
   0xc   :  { %90 = vmatpush.msra.mxu0 %v52_v10  ;;  %1224 = vmatpush.msra.mxu3 %v52_v10  ;;  %v44_v16 = vld [vmem:[%s1753_s3] sm:$0xff]  ;;  %v29_v20 = vld [vmem:[%s1752_s2 + $0x8] sm:$0xff]  ;;  %v30_v23 = vld [vmem:[%s1752_s2 + $0x10] sm:$0xff] }
   0xd   :  { %151 = vmatpush.msra.mxu1 %v38_v11  ;;  %1237 = vmatpush.msra.mxu2 %v38_v11  ;;  %v28_v17 = vld [vmem:[%s1752_s2] sm:$0xff]  ;;  %v49_v22 = vld [vmem:[%s1753_s3 + $0x28] sm:$0xff]  ;;  %v35_v25 = vld [vmem:[%s1752_s2 + $0x38] sm:$0xff] }
   0xe   :  { %91 = vmatpush.msra.mxu0 %v51_v12  ;;  %1225 = vmatpush.msra.mxu3 %v51_v12  ;;  %v48_v19 = vld [vmem:[%s1753_s3 + $0x20] sm:$0xff]  ;;  %v33_v24 = vld [vmem:[%s1752_s2 + $0x28] sm:$0xff]  ;;  %v34_v27 = vld [vmem:[%s1752_s2 + $0x30] sm:$0xff] }
   0xf   :  { %152 = vmatpush.msra.mxu1 %v37_v13  ;;  %1239 = vmatpush.msra.mxu2 %v37_v13  ;;  %v32_v21 = vld [vmem:[%s1752_s2 + $0x20] sm:$0xff]  ;;  %v45_v59 = vld [vmem:[%s1753_s3 + $0x8] sm:$0xff] }
  0x10   :  { %92 = vmatpush.msra.mxu0 %v50_v14  ;;  %1226 = vmatpush.msra.mxu3 %v50_v14 }
  0x11   :  { %153 = vmatpush.msra.mxu1 %v36_v15  ;;  %1205 = vmatmul.msk.f32.vlgmr.msra.gmra.mxu0 %vm58_vm0, %v44_v16 }
  0x12   :  { %1211 = vmatmul.msk.f32.vlgmr.msra.gmra.mxu1 %vm58_vm0, %v28_v17  ;;  %1241 = vmatpush.msra.mxu2 %v36_v15 }
  0x13   :  { %1214 = vmatmul.msk.f32.vlgmr.msra.gmra.mxu2 %vm58_vm0, %v31_v18  ;;  %1209 = vmatmul.msk.f32.vlgmr.msra.gmra.mxu3 %vm58_vm0, %v48_v19 }
  0x14   :  { %1228 = vmatpush.msrb.mxu3 %v43_v1  ;;  %1245 = vset.pattern.permute.xlu1 %v1275_v26 }
  0x15   :  { %1247 = vset.pattern.permute.xlu2 %v1275_v26  ;;  %1246 = vset.pattern.permute.xlu0 %v1275_v26 }
  0x16   :  { %1230 = vmatpush.msrb.mxu3 %v42_v3 }
  0x18   :  { %1232 = vmatpush.msrb.mxu3 %v41_v5 }
  0x19   :  { %1206 = vmatmul.msk.f32.gmra.mxu0 %vm58_vm0, %v45_v59 }
  0x1a   :  { %1212 = vmatmul.msk.f32.gmra.mxu1 %vm58_vm0, %v29_v20  ;;  %1234 = vmatpush.msrb.mxu3 %v40_v7 }
  0x1b   :  { %1215 = vmatmul.msk.f32.gmra.mxu2 %vm58_vm0, %v32_v21  ;;  %1210 = vmatmul.msk.f32.gmra.mxu3 %vm58_vm0, %v49_v22 }
  0x1c   :  { %1236 = vmatpush.msrb.mxu3 %v39_v9 }
  0x1e   :  { %1238 = vmatpush.msrb.mxu3 %v38_v11  ;;  %v46_v11 = vld [vmem:[%s1753_s3 + $0x10] sm:$0xff] }
  0x20   :  { %1240 = vmatpush.msrb.mxu3 %v37_v13 }
  0x21   :  { %1207 = vmatmul.msk.f32.gmra.mxu0 %vm58_vm0, %v46_v11 }
  0x22   :  { %1213 = vmatmul.msk.f32.gmra.mxu1 %vm58_vm0, %v30_v23  ;;  %1242 = vmatpush.msrb.mxu3 %v36_v15 }
  0x23   :  { %1216 = vmatmul.msk.f32.gmra.mxu2 %vm58_vm0, %v33_v24  ;;  %1218 = vmatmul.msk.f32.vlgmr.msrb.gmra.mxu3 %vm58_vm0, %v35_v25 }
  0x2b   :  { %1217 = vmatmul.msk.f32.gmra.mxu2 %vm58_vm0, %v34_v27 }
  0x8e   :  { %v1414_v29 = vpop.f32.mrf.mxu0 }
  0x8f   :  { %v155_v30 = vpop.f32.mrf.mxu1  ;;  %v852_v32 = vperm.slane %v1414_v29, 0  ;;  %v810_v33 = vrot.slane %v1414_v29, 1  ;;  %v812_v36 = vrot.slane %v1414_v29, 3  ;;  %v813_v38 = vrot.slane %v1414_v29, 4 }
  0x90   :  { %v156_v31 = vadd.f32 %v155_v30, %v1412_v28  ;;  %v811_v39 = vrot.slane %v1414_v29, 2 }
  0x91   :  { %901 = vperm.xlu1 %1245, %v852_v32   ;;  %v853_v34 = vperm.slane %v810_v33, 0  ;;  %v855_v37 = vperm.slane %v812_v36, 0  ;;  %v856_v40 = vperm.slane %v813_v38, 0 }
  0x92   :  { %v309_v35 = vperm.slane %v156_v31, 0  ;;  %v854_v41 = vperm.slane %v811_v39, 0  ;;  %v254_v42 = vrot.slane %v156_v31, 2  ;;  %v256_v43 = vrot.slane %v156_v31, 4 }
  0x93   :  { %905 = vperm.xlu2 %1247, %v853_v34   ;;  %v253_v44 = vrot.slane %v156_v31, 1  ;;  %v255_v48 = vrot.slane %v156_v31, 3  ;;  %v257_v49 = vrot.slane %v156_v31, 5  ;;  %v258_v50 = vrot.slane %v156_v31, 6 }
  0x94   :  { %374 = vperm.xlu0 %1246, %v309_v35   ;;  %v311_v45 = vperm.slane %v254_v42, 0  ;;  %v313_v46 = vperm.slane %v256_v43, 0  ;;  %v259_v58 = vrot.slane %v156_v31, 7  ;;  %v47_v31 = vld [vmem:[%s1753_s3 + $0x18] sm:$0xff] }
  0x95   :  { %v310_v47 = vperm.slane %v253_v44, 0  ;;  %v312_v51 = vperm.slane %v255_v48, 0  ;;  %v314_v54 = vperm.slane %v257_v49, 0  ;;  %v315_v55 = vperm.slane %v258_v50, 0  ;;  %1208 = vmatmul.msk.f32.gmra.mxu0 %vm58_vm0, %v47_v31 }
  0x96   :  { %v164_v53 = vpop.f32.mrf.mxu2  ;;  %v316_v60 = vperm.slane %v259_v58, 0  ;;  %v1438_v48 = vpop.f32.mrf.mxu3 }
  0x97   :  { %v158_v52 = vpop.f32.mrf.mxu1  ;;  %v165_v57 = vadd.f32 %v164_v53, %v1412_v28 }
  0x98   :  { %v159_v56 = vadd.f32 %v158_v52, %v1412_v28 }
  0x99   :  { %913 = vperm.xlu1 %1245, %v855_v37   ;;  %v333_v62 = vperm.slane %v165_v57, 0  ;;  %v274_v63 = vrot.slane %v165_v57, 1  ;;  %v275_v0 = vrot.slane %v165_v57, 2  ;;  %v276_v1 = vrot.slane %v165_v57, 3 }
  0x9a   :  { %v317_v61 = vperm.slane %v159_v56, 0  ;;  %v277_v5 = vrot.slane %v165_v57, 4  ;;  %v278_v6 = vrot.slane %v165_v57, 5  ;;  %v279_v7 = vrot.slane %v165_v57, 6 }
  0x9b   :  { %917 = vperm.xlu2 %1247, %v856_v40   ;;  %v334_v2 = vperm.slane %v274_v63, 0  ;;  %v335_v3 = vperm.slane %v275_v0, 0  ;;  %v336_v4 = vperm.slane %v276_v1, 0  ;;  %v280_v12 = vrot.slane %v165_v57, 7 }
  0x9c   :  { %909 = vperm.xlu0 %1246, %v854_v41   ;;  %v337_v8 = vperm.slane %v277_v5, 0  ;;  %v338_v9 = vperm.slane %v278_v6, 0  ;;  %v339_v10 = vperm.slane %v279_v7, 0  ;;  %v262_v13 = vrot.slane %v159_v56, 3 }
  0x9d   :  { %v260_v14 = vrot.slane %v159_v56, 1  ;;  %v340_v15 = vperm.slane %v280_v12, 0  ;;  %v261_v18 = vrot.slane %v159_v56, 2  ;;  %v265_v19 = vrot.slane %v159_v56, 6 }
  0x9e   :  { %v320_v16 = vperm.slane %v262_v13, 0  ;;  %v263_v20 = vrot.slane %v159_v56, 4  ;;  %v167_v22 = vpop.f32.mrf.mxu2  ;;  %v264_v26 = vrot.slane %v159_v56, 5  ;;  %v266_v27 = vrot.slane %v159_v56, 7  ;;  %v1440_v59 = vpop.f32.mrf.mxu3 }
  0x9f   :  { %v318_v17 = vperm.slane %v260_v14, 0  ;;  %v319_v21 = vperm.slane %v261_v18, 0  ;;  %v323_v23 = vperm.slane %v265_v19, 0  ;;  %v168_v25 = vadd.f32 %v167_v22, %v1412_v28  ;;  %v161_v30 = vpop.f32.mrf.mxu1 }
  0xa0   :  { %v321_v24 = vperm.slane %v263_v20, 0  ;;  %v322_v32 = vperm.slane %v264_v26, 0  ;;  %v324_v34 = vperm.slane %v266_v27, 0  ;;  %v162_v35 = vadd.f32 %v161_v30, %v1412_v28 }
  0xa1   :  { %382 = vperm.xlu1 %1245, %v311_v45   ;;  %v341_v33 = vperm.slane %v168_v25, 0  ;;  %v283_v36 = vrot.slane %v168_v25, 3  ;;  %v281_v37 = vrot.slane %v168_v25, 1  ;;  %v282_v41 = vrot.slane %v168_v25, 2 }
  0xa2   :  { %v325_v38 = vperm.slane %v162_v35, 0  ;;  %v286_v42 = vrot.slane %v168_v25, 6  ;;  %v284_v43 = vrot.slane %v168_v25, 4  ;;  %v267_v50 = vrot.slane %v162_v35, 1 }
  0xa3   :  { %390 = vperm.xlu2 %1247, %v313_v46   ;;  %v344_v39 = vperm.slane %v283_v36, 0  ;;  %v342_v40 = vperm.slane %v281_v37, 0  ;;  %v343_v44 = vperm.slane %v282_v41, 0  ;;  %v270_v57 = vrot.slane %v162_v35, 4 }
  0xa4   :  { %378 = vperm.xlu0 %1246, %v310_v47   ;;  %v347_v45 = vperm.slane %v286_v42, 0  ;;  %v345_v46 = vperm.slane %v284_v43, 0  ;;  %v285_v47 = vrot.slane %v168_v25, 5  ;;  %v326_v53 = vperm.slane %v267_v50, 0 }
  0xa5   :  { %v268_v58 = vrot.slane %v162_v35, 2  ;;  %v272_v63 = vrot.slane %v162_v35, 6 }
  0xa6   :  { %v346_v52 = vperm.slane %v285_v47, 0  ;;  %v170_v0 = vpop.f32.mrf.mxu2  ;;  %v176_v7 = vpop.f32.mrf.mxu3 }
  0xa7   :  { %v331_v5 = vperm.slane %v272_v63, 0  ;;  %v1450_v6 = vadd.f32 %v170_v0, %v1412_v28  ;;  %v1455_v11 = vadd.f32 %v176_v7, %v1412_v28 }
  0xa9   :  { %386 = vperm.xlu1 %1245, %v312_v51   ;;  %v287_v51 = vrot.slane %v168_v25, 7  ;;  %v289_v12 = vrot.slane %v1450_v6, 2  ;;  %v349_v18 = vperm.slane %v1450_v6, 0  ;;  %v365_v19 = vperm.slane %v1455_v11, 0 }
  0xaa   :  { %v290_v22 = vrot.slane %v1450_v6, 3  ;;  %v288_v25 = vrot.slane %v1450_v6, 1  ;;  %v292_v26 = vrot.slane %v1450_v6, 5 }
  0xab   :  { %394 = vperm.xlu2 %1247, %v314_v54   ;;  %v348_v54 = vperm.slane %v287_v51, 0  ;;  %v351_v20 = vperm.slane %v289_v12, 0 }
  0xac   :  { %398 = vperm.xlu0 %1246, %v315_v55   ;;  %v269_v55 = vrot.slane %v162_v35, 3  ;;  %v352_v31 = vperm.slane %v290_v22, 0  ;;  %v354_v36 = vperm.slane %v292_v26, 0 }
  0xb1   :  { %402 = vperm.xlu1 %1245, %v316_v60   ;;  %v328_v60 = vperm.slane %v269_v55, 0  ;;  %v303_v55 = vrot.slane %v1455_v11, 2 }
  0xb3   :  { %406 = vperm.xlu2 %1247, %v317_v61   ;;  %v329_v61 = vperm.slane %v270_v57, 0 }
  0xb4   :  { %470 = vperm.xlu0 %1246, %v333_v62   ;;  %v327_v62 = vperm.slane %v268_v58, 0 }
  0xb9   :  { %474 = vperm.xlu1 %1245, %v334_v2   ;;  %v273_v2 = vrot.slane %v162_v35, 7 }
  0xbb   :  { %478 = vperm.xlu2 %1247, %v335_v3   ;;  %v271_v3 = vrot.slane %v162_v35, 5  ;;  %v350_v35 = vperm.slane %v288_v25, 0 }
  0xbc   :  { %482 = vperm.xlu0 %1246, %v336_v4   ;;  %v1447_v4 = vld [vmem:[%s1751_s1] sm:$0xff] }
  0xbd   :  { %vm757_vm1 = vcmp.eq.s32.totalorder %v1447_v4, 1  ;;  %vm756_vm2 = vcmp.eq.s32.totalorder %v1447_v4, 0  ;;  %vm758_vm3 = vcmp.eq.s32.totalorder %v1447_v4, 2  ;;  %vm759_vm4 = vcmp.eq.s32.totalorder %v1447_v4, 3 }
  0xbe   :  { %vm760_vm5 = vcmp.eq.s32.totalorder %v1447_v4, 4 }
  0xc1   :  { %486 = vperm.xlu1 %1245, %v337_v8   ;;  %v332_v8 = vperm.slane %v273_v2, 0  ;;  %v367_v2 = vperm.slane %v303_v55, 0 }
  0xc3   :  { %490 = vperm.xlu2 %1247, %v338_v9   ;;  %v330_v9 = vperm.slane %v271_v3, 0 }
  0xc4   :  { %494 = vperm.xlu0 %1246, %v339_v10  }
  0xc9   :  { %498 = vperm.xlu1 %1245, %v340_v15  }
  0xcb   :  { %418 = vperm.xlu2 %1247, %v320_v16  }
  0xcc   :  { %410 = vperm.xlu0 %1246, %v318_v17  }
  0xd1   :  { %414 = vperm.xlu1 %1245, %v319_v21  }
  0xd3   :  { %430 = vperm.xlu2 %1247, %v323_v23  }
  0xd4   :  { %422 = vperm.xlu0 %1246, %v321_v24  }
  0xd9   :  { %426 = vperm.xlu1 %1245, %v322_v32  }
  0xdb   :  { %502 = vperm.xlu2 %1247, %v341_v33   ;;  %v1473_v33 = vld [vmem:[%s1750_s0] sm:$0xff] }
  0xdc   :  { %434 = vperm.xlu0 %1246, %v324_v34   ;;  %vm181_vm6 = vcmp.eq.s32.totalorder %v1473_v33, 0  ;;  %vm182_vm7 = vcmp.eq.s32.totalorder %v1473_v33, 1  ;;  %vm183_vm8 = vcmp.eq.s32.totalorder %v1473_v33, 2  ;;  %vm184_vm9 = vcmp.eq.s32.totalorder %v1473_v33, 3 }
  0xdd   :  { %vm185_vm10 = vcmp.eq.s32.totalorder %v1473_v33, 4  ;;  %vm186_vm11 = vcmp.eq.s32.totalorder %v1473_v33, 5  ;;  %vm187_vm12 = vcmp.eq.s32.totalorder %v1473_v33, 6  ;;  %vm188_vm13 = vcmp.eq.s32.totalorder %v1473_v33, 7 }
  0xde   :  { %vm189_vm14 = vcmp.eq.s32.totalorder %v1473_v33, 8  ;;  %vm190_vm15 = vcmp.eq.s32.totalorder %v1473_v33, 9  ;;  %vm191_vm0 = vcmp.eq.s32.totalorder %v1473_v33, 10 }
  0xe1   :  { %438 = vperm.xlu1 %1245, %v325_v38  }
  0xe3   :  { %514 = vperm.xlu2 %1247, %v344_v39   ;;  %v293_v39 = vrot.slane %v1450_v6, 6 }
  0xe4   :  { %506 = vperm.xlu0 %1246, %v342_v40   ;;  %v302_v40 = vrot.slane %v1455_v11, 1 }
  0xe6   :  { %v366_v50 = vperm.slane %v302_v40, 0 }
  0xe9   :  { %510 = vperm.xlu1 %1245, %v343_v44   ;;  %v291_v44 = vrot.slane %v1450_v6, 4 }
  0xeb   :  { %526 = vperm.xlu2 %1247, %v347_v45  }
  0xec   :  { %518 = vperm.xlu0 %1246, %v345_v46  }
  0xed   :  { %v906_v49 = vpop.permute.xlu2 %905 }
  0xee   :  { %v1093_v13 = vsel %vm757_vm1, %v906_v49, 0.0  ;;  %v355_v49 = vperm.slane %v293_v39, 0  ;;  %vm192_vm1 = vcmp.eq.s32.totalorder %v1473_v33, 11 }
  0xf1   :  { %522 = vperm.xlu1 %1245, %v346_v52   ;;  %v353_v52 = vperm.slane %v291_v44, 0 }
  0xf3   :  { %442 = vperm.xlu2 %1247, %v326_v53  }
  0xf4   :  { %530 = vperm.xlu0 %1246, %v348_v54  }
  0xf5   :  { %v918_v56 = vpop.permute.xlu2 %917 }
  0xf6   :  { %v1096_v37 = vsel %vm760_vm5, %v918_v56, 0.0  ;;  %vm196_vm5 = vcmp.eq.s32.totalorder %v1473_v33, 15 }
  0xf9   :  { %450 = vperm.xlu1 %1245, %v328_v60  }
  0xfb   :  { %454 = vperm.xlu2 %1247, %v329_v61   ;;  %v294_v61 = vrot.slane %v1450_v6, 7 }
  0xfc   :  { %446 = vperm.xlu0 %1246, %v327_v62   ;;  %v305_v62 = vrot.slane %v1455_v11, 4 }
  0xfd   :  { %v1442_v1 = vpop.permute.xlu2 %390  ;;  %v356_v7 = vperm.slane %v294_v61, 0 }
  0xfe   :  { %v633_v63 = vsel %vm185_vm10, %v1442_v1, 0.0  ;;  %v306_v1 = vrot.slane %v1455_v11, 5  ;;  %vm201_vm10 = vcmp.eq.s32.totalorder %v1473_v33, 20 }
 0x101   :  { %462 = vperm.xlu1 %1245, %v331_v5  }
 0x103   :  { %v902_v10 = vpop.permute.xlu1 %901  ;;  %466 = vperm.xlu2 %1247, %v332_v8   ;;  %v369_v8 = vperm.slane %v305_v62, 0  ;;  %v816_v62 = vrot.slane %v1414_v29, 7 }
 0x104   :  { %458 = vperm.xlu0 %1246, %v330_v9   ;;  %v1092_v14 = vsel %vm756_vm2, %v902_v10, 0.0  ;;  %v173_v10 = vpop.f32.mrf.mxu2  ;;  %vm193_vm2 = vcmp.eq.s32.totalorder %v1473_v33, 12 }
 0x105   :  { %v1140_v15 = vadd.f32 %v1093_v13, %v1092_v14  ;;  %v1458_v17 = vpop.permute.xlu2 %394 }
 0x106   :  { %v375_v16 = vpop.permute.xlu0 %374  ;;  %v634_v3 = vsel %vm186_vm11, %v1458_v17, 0.0  ;;  %v174_v17 = vadd.f32 %v173_v10, %v1412_v28  ;;  %vm202_vm11 = vcmp.eq.s32.totalorder %v1473_v33, 21 }
 0x107   :  { %v629_v45 = vsel %vm181_vm6, %v375_v16, 0.0  ;;  %vm197_vm6 = vcmp.eq.s32.totalorder %v1473_v33, 16 }
 0x108   :  { %v295_v26 = vrot.slane %v174_v17, 1  ;;  %v296_v39 = vrot.slane %v174_v17, 2  ;;  %v297_v40 = vrot.slane %v174_v17, 3 }
 0x109   :  { %534 = vperm.xlu1 %1245, %v349_v18   ;;  %v304_v18 = vrot.slane %v1455_v11, 3 }
 0x10a   :  { %v358_v28 = vperm.slane %v295_v26, 0  ;;  %v359_v44 = vperm.slane %v296_v39, 0 }
 0x10b   :  { %v914_v21 = vpop.permute.xlu1 %913  ;;  %598 = vperm.xlu2 %1247, %v365_v19   ;;  %v308_v19 = vrot.slane %v1455_v11, 7 }
 0x10c   :  { %542 = vperm.xlu0 %1246, %v351_v20   ;;  %v1095_v32 = vsel %vm759_vm4, %v914_v21, 0.0  ;;  %v370_v21 = vperm.slane %v306_v1, 0  ;;  %vm195_vm4 = vcmp.eq.s32.totalorder %v1473_v33, 14 }
 0x10d   :  { %v1465_v24 = vpop.permute.xlu2 %406  ;;  %v372_v25 = vperm.slane %v308_v19, 0 }
 0x10e   :  { %v910_v23 = vpop.permute.xlu0 %909  ;;  %v637_v20 = vsel %vm189_vm14, %v1465_v24, 0.0  ;;  %vm205_vm14 = vcmp.eq.s32.totalorder %v1473_v33, 24 }
 0x10f   :  { %v1094_v27 = vsel %vm758_vm3, %v910_v23, 0.0  ;;  %v368_v23 = vperm.slane %v304_v18, 0  ;;  %vm194_vm3 = vcmp.eq.s32.totalorder %v1473_v33, 13 }
 0x110   :  { %v1141_v30 = vadd.f32 %v1140_v15, %v1094_v27 }
 0x111   :  { %546 = vperm.xlu1 %1245, %v352_v31  }
 0x112   :  { %v1142_v34 = vadd.f32 %v1141_v30, %v1095_v32  ;;  %v307_v32 = vrot.slane %v1455_v11, 6 }
 0x113   :  { %538 = vperm.xlu2 %1247, %v350_v35   ;;  %v383_v38 = vpop.permute.xlu1 %382 }
 0x114   :  { %554 = vperm.xlu0 %1246, %v354_v36   ;;  %v1479_v41 = vadd.f32 %v1142_v34, %v1096_v37  ;;  %v631_v51 = vsel %vm183_vm8, %v383_v38, 0.0  ;;  %v357_v34 = vperm.slane %v174_v17, 0  ;;  %v371_v24 = vperm.slane %v307_v32, 0 }
 0x115   :  { %v1482_v42 = vpop.permute.xlu2 %478  ;;  %v298_v36 = vrot.slane %v174_v17, 4  ;;  %vm199_vm8 = vcmp.eq.s32.totalorder %v1473_v33, 18 }
 0x116   :  { %v379_v43 = vpop.permute.xlu0 %378 }
 0x117   :  { %v630_v46 = vsel %vm182_vm7, %v379_v43, 0.0  ;;  %v361_v43 = vperm.slane %v298_v36, 0  ;;  %vm198_vm7 = vcmp.eq.s32.totalorder %v1473_v33, 17 }
 0x118   :  { %v693_v47 = vadd.f32 %v630_v46, %v629_v45  ;;  %v360_v45 = vperm.slane %v297_v40, 0  ;;  %v301_v46 = vrot.slane %v174_v17, 7 }
 0x119   :  { %558 = vperm.xlu1 %1245, %v355_v49  }
 0x11a   :  { %v694_v53 = vadd.f32 %v693_v47, %v631_v51  ;;  %v300_v51 = vrot.slane %v174_v17, 6 }
 0x11b   :  { %550 = vperm.xlu2 %1247, %v353_v52   ;;  %v387_v54 = vpop.permute.xlu1 %386 }
 0x11c   :  { %602 = vperm.xlu0 %1246, %v366_v50   ;;  %v632_v56 = vsel %vm184_vm9, %v387_v54, 0.0  ;;  %v299_v50 = vrot.slane %v174_v17, 5  ;;  %v364_v54 = vperm.slane %v301_v46, 0  ;;  %vm200_vm9 = vcmp.eq.s32.totalorder %v1473_v33, 19 }
 0x11d   :  { %v695_v57 = vadd.f32 %v694_v53, %v632_v56  ;;  %v1489_v58 = vpop.permute.xlu2 %490  ;;  %v363_v56 = vperm.slane %v300_v51, 0 }
 0x11e   :  { %v399_v60 = vpop.permute.xlu0 %398  ;;  %v362_v55 = vperm.slane %v299_v50, 0 }
 0x11f   :  { %v696_v0 = vadd.f32 %v695_v57, %v633_v63  ;;  %v635_v9 = vsel %vm187_vm12, %v399_v60, 0.0  ;;  %v815_v60 = vrot.slane %v1414_v29, 6  ;;  %vm203_vm12 = vcmp.eq.s32.totalorder %v1473_v33, 22 }
 0x121   :  { %v697_v5 = vadd.f32 %v696_v0, %v634_v3  ;;  %606 = vperm.xlu1 %1245, %v367_v2   ;;  %v814_v3 = vrot.slane %v1414_v29, 5 }
 0x123   :  { %v698_v6 = vadd.f32 %v697_v5, %v635_v9  ;;  %562 = vperm.xlu2 %1247, %v356_v7   ;;  %v403_v12 = vpop.permute.xlu1 %402  ;;  %v97_v7 = vpop.f32.mrf.mxu0  ;;  %v858_v9 = vperm.slane %v815_v60, 0  ;;  %v857_v1 = vperm.slane %v814_v3, 0 }
 0x124   :  { %614 = vperm.xlu0 %1246, %v369_v8   ;;  %v636_v13 = vsel %vm188_vm13, %v403_v12, 0.0  ;;  %v818_v17 = vrot.slane %v97_v7, 2  ;;  %vm204_vm13 = vcmp.eq.s32.totalorder %v1473_v33, 23 }
 0x125   :  { %v699_v14 = vadd.f32 %v698_v6, %v636_v13  ;;  %v419_v15 = vpop.permute.xlu2 %418  ;;  %v859_v6 = vperm.slane %v816_v62, 0  ;;  %v817_v13 = vrot.slane %v97_v7, 1 }
 0x126   :  { %v1499_v16 = vpop.permute.xlu0 %470  ;;  %v640_v5 = vsel %vm192_vm1, %v419_v15, 0.0  ;;  %vm208_vm1 = vcmp.eq.s32.totalorder %v1473_v33, 27 }
 0x127   :  { %v700_v22 = vadd.f32 %v699_v14, %v637_v20  ;;  %v861_v20 = vperm.slane %v817_v13, 0 }
 0x129   :  { %618 = vperm.xlu1 %1245, %v370_v21  }
 0x12b   :  { %610 = vperm.xlu2 %1247, %v368_v23   ;;  %v1505_v27 = vpop.permute.xlu1 %474  ;;  %v862_v23 = vperm.slane %v818_v17, 0 }
 0x12c   :  { %626 = vperm.xlu0 %1246, %v372_v25   ;;  %v860_v25 = vperm.slane %v97_v7, 0 }
 0x12d   :  { %v1507_v30 = vpop.permute.xlu2 %430 }
 0x12e   :  { %v1509_v31 = vpop.permute.xlu0 %482  ;;  %v643_v21 = vsel %vm195_vm4, %v1507_v30, 0.0  ;;  %v821_v30 = vrot.slane %v97_v7, 5  ;;  %vm211_vm4 = vcmp.eq.s32.totalorder %v1473_v33, 30 }
 0x131   :  { %570 = vperm.xlu1 %1245, %v358_v28  }
 0x133   :  { %622 = vperm.xlu2 %1247, %v371_v24   ;;  %v1512_v35 = vpop.permute.xlu1 %486 }
 0x134   :  { %566 = vperm.xlu0 %1246, %v357_v34   ;;  %v820_v34 = vrot.slane %v97_v7, 4 }
 0x135   :  { %v1514_v37 = vpop.permute.xlu2 %502 }
 0x136   :  { %v1516_v38 = vpop.permute.xlu0 %494 }
 0x139   :  { %582 = vperm.xlu1 %1245, %v361_v43   ;;  %v819_v43 = vrot.slane %v97_v7, 3 }
 0x13b   :  { %574 = vperm.xlu2 %1247, %v359_v44   ;;  %v1518_v11 = vpop.permute.xlu1 %498  ;;  %v863_v50 = vperm.slane %v819_v43, 0 }
 0x13c   :  { %578 = vperm.xlu0 %1246, %v360_v45   ;;  %v864_v45 = vperm.slane %v820_v34, 0 }
 0x13d   :  { %v1521_v47 = vpop.permute.xlu2 %514 }
 0x13e   :  { %v411_v49 = vpop.permute.xlu0 %410 }
 0x13f   :  { %v638_v52 = vsel %vm190_vm15, %v411_v49, 0.0  ;;  %v865_v49 = vperm.slane %v821_v30, 0  ;;  %vm206_vm15 = vcmp.eq.s32.totalorder %v1473_v33, 25 }
 0x140   :  { %v701_v53 = vadd.f32 %v700_v22, %v638_v52  ;;  %v823_v52 = vrot.slane %v97_v7, 7 }
 0x141   :  { %594 = vperm.xlu1 %1245, %v364_v54  }
 0x143   :  { %586 = vperm.xlu2 %1247, %v362_v55   ;;  %v415_v57 = vpop.permute.xlu1 %414 }
 0x144   :  { %590 = vperm.xlu0 %1246, %v363_v56   ;;  %v639_v61 = vsel %vm191_vm0, %v415_v57, 0.0  ;;  %v822_v56 = vrot.slane %v97_v7, 6  ;;  %v867_v57 = vperm.slane %v823_v52, 0  ;;  %vm207_vm0 = vcmp.eq.s32.totalorder %v1473_v33, 26 }
 0x145   :  { %v702_v63 = vadd.f32 %v701_v53, %v639_v61  ;;  %v1527_v0 = vpop.permute.xlu2 %526  ;;  %v100_v53 = vpop.f32.mrf.mxu0 }
 0x146   :  { %v423_v2 = vpop.permute.xlu0 %422  ;;  %v868_v60 = vperm.slane %v100_v53, 0  ;;  %v866_v61 = vperm.slane %v822_v56, 0  ;;  %v825_v62 = vrot.slane %v100_v53, 2  ;;  %v824_v3 = vrot.slane %v100_v53, 1 }
 0x147   :  { %v703_v8 = vadd.f32 %v702_v63, %v640_v5  ;;  %v641_v10 = vsel %vm193_vm2, %v423_v2, 0.0  ;;  %v826_v2 = vrot.slane %v100_v53, 3  ;;  %v827_v17 = vrot.slane %v100_v53, 4 }
 0x148   :  { %v830_v30 = vrot.slane %v100_v53, 7  ;;  %vm209_vm2 = vcmp.eq.s32.totalorder %v1473_v33, 28 }
 0x149   :  { %v704_v12 = vadd.f32 %v703_v8, %v641_v10  ;;  %925 = vperm.xlu1 %1245, %v858_v9   ;;  %v870_v9 = vperm.slane %v825_v62, 0  ;;  %v871_v10 = vperm.slane %v826_v2, 0 }
 0x14b   :  { %929 = vperm.xlu2 %1247, %v859_v6   ;;  %v427_v14 = vpop.permute.xlu1 %426  ;;  %v869_v6 = vperm.slane %v824_v3, 0 }
 0x14c   :  { %921 = vperm.xlu0 %1246, %v857_v1   ;;  %v642_v18 = vsel %vm194_vm3, %v427_v14, 0.0  ;;  %v829_v14 = vrot.slane %v100_v53, 6  ;;  %vm210_vm3 = vcmp.eq.s32.totalorder %v1473_v33, 29 }
 0x14d   :  { %v705_v29 = vadd.f32 %v704_v12, %v642_v18  ;;  %v443_v15 = vpop.permute.xlu2 %442  ;;  %v828_v12 = vrot.slane %v100_v53, 5  ;;  %v653_v53 = vsel %vm205_vm14, %v1499_v16, 0.0  ;;  %vm221_vm14 = vcmp.eq.s32.totalorder %v1473_v33, 40 }
 0x14e   :  { %v435_v19 = vpop.permute.xlu0 %434  ;;  %v646_v44 = vsel %vm198_vm7, %v443_v15, 0.0  ;;  %vm214_vm7 = vcmp.eq.s32.totalorder %v1473_v33, 33 }
 0x14f   :  { %v706_v22 = vadd.f32 %v705_v29, %v643_v21  ;;  %v644_v26 = vsel %vm196_vm5, %v435_v19, 0.0  ;;  %v873_v15 = vperm.slane %v828_v12, 0  ;;  %vm212_vm5 = vcmp.eq.s32.totalorder %v1473_v33, 31 }
 0x151   :  { %v707_v28 = vadd.f32 %v706_v22, %v644_v26  ;;  %937 = vperm.xlu1 %1245, %v861_v20   ;;  %v1554_v20 = vpop.f32.mrf.mxu0  ;;  %v874_v22 = vperm.slane %v829_v14, 0 }
 0x152   :  { %v834_v3 = vrot.slane %v1554_v20, 4 }
 0x153   :  { %941 = vperm.xlu2 %1247, %v862_v23   ;;  %v439_v32 = vpop.permute.xlu1 %438  ;;  %v872_v23 = vperm.slane %v827_v17, 0 }
 0x154   :  { %933 = vperm.xlu0 %1246, %v860_v25   ;;  %v645_v24 = vsel %vm197_vm6, %v439_v32, 0.0  ;;  %v831_v32 = vrot.slane %v1554_v20, 1  ;;  %vm213_vm6 = vcmp.eq.s32.totalorder %v1473_v33, 32 }
 0x155   :  { %v708_v36 = vadd.f32 %v707_v28, %v645_v24  ;;  %v455_v39 = vpop.permute.xlu2 %454 }
 0x156   :  { %v1537_v40 = vpop.permute.xlu0 %506  ;;  %v649_v25 = vsel %vm201_vm10, %v455_v39, 0.0  ;;  %vm217_vm10 = vcmp.eq.s32.totalorder %v1473_v33, 36 }
 0x157   :  { %v709_v46 = vadd.f32 %v708_v36, %v646_v44  ;;  %v876_v36 = vperm.slane %v1554_v20, 0  ;;  %v877_v44 = vperm.slane %v831_v32, 0  ;;  %v660_v32 = vsel %vm212_vm5, %v1518_v11, 0.0 }
 0x158   :  { %v839_v11 = vrot.slane %v1438_v48, 2  ;;  %vm228_vm5 = vcmp.eq.s32.totalorder %v1473_v33, 47 }
 0x159   :  { %949 = vperm.xlu1 %1245, %v864_v45  }
 0x15b   :  { %953 = vperm.xlu2 %1247, %v865_v49   ;;  %v1539_v51 = vpop.permute.xlu1 %510  ;;  %v875_v49 = vperm.slane %v830_v30, 0 }
 0x15c   :  { %945 = vperm.xlu0 %1246, %v863_v50   ;;  %v833_v50 = vrot.slane %v1554_v20, 3 }
 0x15d   :  { %v467_v54 = vpop.permute.xlu2 %466 }
 0x15e   :  { %v1541_v55 = vpop.permute.xlu0 %518  ;;  %v652_v52 = vsel %vm204_vm13, %v467_v54, 0.0  ;;  %v879_v2 = vperm.slane %v833_v50, 0  ;;  %v832_v54 = vrot.slane %v1554_v20, 2  ;;  %v884_v50 = vperm.slane %v1438_v48, 0 }
 0x15f   :  { %vm220_vm13 = vcmp.eq.s32.totalorder %v1473_v33, 39 }
 0x160   :  { %v878_v12 = vperm.slane %v832_v54, 0  ;;  %v840_v54 = vrot.slane %v1438_v48, 3 }
 0x161   :  { %961 = vperm.xlu1 %1245, %v867_v57  }
 0x163   :  { %965 = vperm.xlu2 %1247, %v868_v60   ;;  %v1543_v63 = vpop.permute.xlu1 %522 }
 0x164   :  { %957 = vperm.xlu0 %1246, %v866_v61  }
 0x165   :  { %v1545_v5 = vpop.permute.xlu2 %598 }
 0x166   :  { %v1547_v8 = vpop.permute.xlu0 %530 }
 0x169   :  { %973 = vperm.xlu1 %1245, %v870_v9   ;;  %v654_v9 = vsel %vm206_vm15, %v1505_v27, 0.0  ;;  %v836_v27 = vrot.slane %v1554_v20, 6  ;;  %vm222_vm15 = vcmp.eq.s32.totalorder %v1473_v33, 41 }
 0x16b   :  { %977 = vperm.xlu2 %1247, %v871_v10   ;;  %v451_v7 = vpop.permute.xlu1 %450 }
 0x16c   :  { %969 = vperm.xlu0 %1246, %v869_v6   ;;  %v648_v19 = vsel %vm200_vm9, %v451_v7, 0.0  ;;  %v655_v6 = vsel %vm207_vm0, %v1482_v42, 0.0  ;;  %v880_v7 = vperm.slane %v834_v3, 0  ;;  %vm216_vm9 = vcmp.eq.s32.totalorder %v1473_v33, 35 }
 0x16d   :  { %v1551_v1 = vpop.permute.xlu2 %538  ;;  %vm223_vm0 = vcmp.eq.s32.totalorder %v1473_v33, 42 }
 0x16e   :  { %v447_v13 = vpop.permute.xlu0 %446 }
 0x16f   :  { %v647_v18 = vsel %vm199_vm8, %v447_v13, 0.0  ;;  %v656_v13 = vsel %vm208_vm1, %v1509_v31, 0.0  ;;  %v837_v31 = vrot.slane %v1554_v20, 7  ;;  %vm215_vm8 = vcmp.eq.s32.totalorder %v1473_v33, 34 }
 0x170   :  { %v710_v29 = vadd.f32 %v709_v46, %v647_v18  ;;  %v657_v18 = vsel %vm209_vm2, %v1512_v35, 0.0  ;;  %vm224_vm1 = vcmp.eq.s32.totalorder %v1473_v33, 43  ;;  %vm225_vm2 = vcmp.eq.s32.totalorder %v1473_v33, 44 }
 0x171   :  { %985 = vperm.xlu1 %1245, %v873_v15  }
 0x172   :  { %v711_v21 = vadd.f32 %v710_v29, %v648_v19  ;;  %v835_v19 = vrot.slane %v1554_v20, 5 }
 0x173   :  { %989 = vperm.xlu2 %1247, %v874_v22   ;;  %v463_v26 = vpop.permute.xlu1 %462 }
 0x174   :  { %981 = vperm.xlu0 %1246, %v872_v23   ;;  %v712_v28 = vadd.f32 %v711_v21, %v649_v25  ;;  %v651_v45 = vsel %vm203_vm12, %v463_v26, 0.0  ;;  %v658_v21 = vsel %vm210_vm3, %v1489_v58, 0.0  ;;  %v882_v23 = vperm.slane %v836_v27, 0 }
 0x175   :  { %v1559_v34 = vpop.permute.xlu2 %550  ;;  %v659_v25 = vsel %vm211_vm4, %v1516_v38, 0.0  ;;  %v883_v26 = vperm.slane %v837_v31, 0  ;;  %v838_v58 = vrot.slane %v1438_v48, 1  ;;  %vm219_vm12 = vcmp.eq.s32.totalorder %v1473_v33, 38 }
 0x176   :  { %v459_v24 = vpop.permute.xlu0 %458  ;;  %vm226_vm3 = vcmp.eq.s32.totalorder %v1473_v33, 45  ;;  %vm227_vm4 = vcmp.eq.s32.totalorder %v1473_v33, 46 }
 0x177   :  { %v650_v43 = vsel %vm202_vm11, %v459_v24, 0.0  ;;  %vm218_vm11 = vcmp.eq.s32.totalorder %v1473_v33, 37 }
 0x178   :  { %v713_v39 = vadd.f32 %v712_v28, %v650_v43  ;;  %v881_v28 = vperm.slane %v835_v19, 0  ;;  %v670_v19 = vsel %vm222_vm15, %v1551_v1, 0.0  ;;  %v846_v1 = vrot.slane %v1440_v59, 2 }
 0x179   :  { %997 = vperm.xlu1 %1245, %v876_v36   ;;  %v661_v36 = vsel %vm213_vm6, %v1514_v37, 0.0  ;;  %vm229_vm6 = vcmp.eq.s32.totalorder %v1473_v33, 48  ;;  %vm238_vm15 = vcmp.eq.s32.totalorder %v1473_v33, 57 }
 0x17a   :  { %v714_v46 = vadd.f32 %v713_v39, %v651_v45  ;;  %v662_v39 = vsel %vm214_vm7, %v1537_v40, 0.0  ;;  %v885_v45 = vperm.slane %v838_v58, 0  ;;  %v847_v58 = vrot.slane %v1440_v59, 3 }
 0x17b   :  { %1001 = vperm.xlu2 %1247, %v877_v44   ;;  %v1566_v57 = vpop.permute.xlu1 %534  ;;  %vm230_vm7 = vcmp.eq.s32.totalorder %v1473_v33, 49 }
 0x17c   :  { %v715_v56 = vadd.f32 %v714_v46, %v652_v52  ;;  %993 = vperm.xlu0 %1246, %v875_v49   ;;  %v663_v46 = vsel %vm215_vm8, %v1539_v51, 0.0  ;;  %v886_v49 = vperm.slane %v839_v11, 0  ;;  %v664_v52 = vsel %vm216_vm9, %v1521_v47, 0.0 }
 0x17d   :  { %v1570_v61 = vpop.permute.xlu2 %562  ;;  %v665_v51 = vsel %vm217_vm10, %v1541_v55, 0.0  ;;  %v842_v47 = vrot.slane %v1438_v48, 5  ;;  %vm231_vm8 = vcmp.eq.s32.totalorder %v1473_v33, 50  ;;  %vm232_vm9 = vcmp.eq.s32.totalorder %v1473_v33, 51 }
 0x17e   :  { %v716_v60 = vadd.f32 %v715_v56, %v653_v53  ;;  %v1572_v62 = vpop.permute.xlu0 %542  ;;  %v841_v53 = vrot.slane %v1438_v48, 4  ;;  %vm233_vm10 = vcmp.eq.s32.totalorder %v1473_v33, 52 }
 0x180   :  { %v717_v10 = vadd.f32 %v716_v60, %v654_v9  ;;  %v666_v9 = vsel %vm218_vm11, %v1543_v63, 0.0  ;;  %v844_v63 = vrot.slane %v1438_v48, 7  ;;  %vm234_vm11 = vcmp.eq.s32.totalorder %v1473_v33, 53 }
 0x181   :  { %1009 = vperm.xlu1 %1245, %v879_v2  }
 0x182   :  { %v718_v16 = vadd.f32 %v717_v10, %v655_v6  ;;  %v888_v6 = vperm.slane %v841_v53, 0  ;;  %v850_v53 = vrot.slane %v1440_v59, 6 }
 0x183   :  { %1013 = vperm.xlu2 %1247, %v880_v7   ;;  %v1582_v17 = vpop.permute.xlu1 %546  ;;  %v889_v7 = vperm.slane %v842_v47, 0 }
 0x184   :  { %v719_v14 = vadd.f32 %v718_v16, %v656_v13  ;;  %1005 = vperm.xlu0 %1246, %v878_v12   ;;  %v667_v16 = vsel %vm219_vm12, %v1527_v0, 0.0  ;;  %v887_v12 = vperm.slane %v840_v54, 0  ;;  %v668_v13 = vsel %vm220_vm13, %v1547_v8, 0.0 }
 0x185   :  { %v1587_v29 = vpop.permute.xlu2 %610  ;;  %v843_v8 = vrot.slane %v1438_v48, 6  ;;  %vm235_vm12 = vcmp.eq.s32.totalorder %v1473_v33, 54  ;;  %vm236_vm13 = vcmp.eq.s32.totalorder %v1473_v33, 55 }
 0x186   :  { %v720_v42 = vadd.f32 %v719_v14, %v657_v18  ;;  %v1589_v15 = vpop.permute.xlu0 %554  ;;  %v669_v18 = vsel %vm221_vm14, %v1566_v57, 0.0  ;;  %vm237_vm14 = vcmp.eq.s32.totalorder %v1473_v33, 56 }
 0x188   :  { %v721_v22 = vadd.f32 %v720_v42, %v658_v21 }
 0x189   :  { %1021 = vperm.xlu1 %1245, %v882_v23   ;;  %v671_v23 = vsel %vm223_vm0, %v1572_v62, 0.0  ;;  %vm761_vm0 = vcmp.eq.s32.totalorder %v1447_v4, 5 }
 0x18a   :  { %v722_v35 = vadd.f32 %v721_v22, %v659_v25  ;;  %v891_v22 = vperm.slane %v844_v63, 0  ;;  %v892_v25 = vperm.slane %v1440_v59, 0  ;;  %v851_v63 = vrot.slane %v1440_v59, 7 }
 0x18b   :  { %1025 = vperm.xlu2 %1247, %v883_v26   ;;  %v1599_v20 = vpop.permute.xlu1 %558  ;;  %v672_v26 = vsel %vm224_vm1, %v1582_v17, 0.0  ;;  %v674_v17 = vsel %vm226_vm3, %v1589_v15, 0.0  ;;  %vm239_vm1 = vcmp.eq.s32.totalorder %v1473_v33, 58  ;;  %vm240_vm3 = vcmp.eq.s32.totalorder %v1473_v33, 59 }
 0x18c   :  { %v723_v24 = vadd.f32 %v722_v35, %v660_v32  ;;  %1017 = vperm.xlu0 %1246, %v881_v28   ;;  %v890_v35 = vperm.slane %v843_v8, 0  ;;  %v673_v32 = vsel %vm225_vm2, %v1559_v34, 0.0  ;;  %v895_v34 = vperm.slane %v847_v58, 0 }
 0x18d   :  { %v1604_v30 = vpop.permute.xlu2 %622  ;;  %vm762_vm2 = vcmp.eq.s32.totalorder %v1447_v4, 6  ;;  %v688_v58 = vsel %vm240_vm3, %v1587_v29, 0.0 }
 0x18e   :  { %v724_v38 = vadd.f32 %v723_v24, %v661_v36  ;;  %v1606_v43 = vpop.permute.xlu0 %602  ;;  %v845_v36 = vrot.slane %v1440_v59, 1 }
 0x190   :  { %v725_v44 = vadd.f32 %v724_v38, %v662_v39  ;;  %v894_v39 = vperm.slane %v846_v1, 0 }
 0x191   :  { %1033 = vperm.xlu1 %1245, %v885_v45  }
 0x192   :  { %v726_v37 = vadd.f32 %v725_v44, %v663_v46  ;;  %v675_v44 = vsel %vm227_vm4, %v1599_v20, 0.0  ;;  %v893_v46 = vperm.slane %v845_v36, 0  ;;  %vm241_vm4 = vcmp.eq.s32.totalorder %v1473_v33, 60 }
 0x193   :  { %1037 = vperm.xlu2 %1247, %v886_v49   ;;  %v1616_v40 = vpop.permute.xlu1 %606 }
 0x194   :  { %v727_v56 = vadd.f32 %v726_v37, %v664_v52  ;;  %1029 = vperm.xlu0 %1246, %v884_v50   ;;  %v676_v37 = vsel %vm228_vm5, %v1570_v61, 0.0  ;;  %v849_v50 = vrot.slane %v1440_v59, 5  ;;  %vm763_vm5 = vcmp.eq.s32.totalorder %v1447_v4, 7 }
 0x195   :  { %v1621_v2 = vpop.permute.xlu2 %574 }
 0x196   :  { %v728_v60 = vadd.f32 %v727_v56, %v665_v51  ;;  %v1623_v3 = vpop.permute.xlu0 %614  ;;  %v848_v51 = vrot.slane %v1440_v59, 4  ;;  %v897_v61 = vperm.slane %v849_v50, 0  ;;  %v679_v54 = vsel %vm231_vm8, %v1621_v2, 0.0 }
 0x197   :  { %v685_v59 = vsel %vm237_vm14, %v1545_v5, 0.0  ;;  %vm243_vm8 = vcmp.eq.s32.totalorder %v1473_v33, 62 }
 0x198   :  { %v729_v10 = vadd.f32 %v728_v60, %v666_v9 }
 0x199   :  { %1045 = vperm.xlu1 %1245, %v888_v6   ;;  %v898_v6 = vperm.slane %v850_v53, 0 }
 0x19a   :  { %v730_v55 = vadd.f32 %v729_v10, %v667_v16  ;;  %v896_v16 = vperm.slane %v848_v51, 0 }
 0x19b   :  { %1049 = vperm.xlu2 %1247, %v889_v7   ;;  %v1633_v27 = vpop.permute.xlu1 %618 }
 0x19c   :  { %v731_v14 = vadd.f32 %v730_v55, %v668_v13  ;;  %1041 = vperm.xlu0 %1246, %v887_v12  }
 0x19d   :  { %v1638_v42 = vpop.permute.xlu2 %586 }
 0x19e   :  { %v732_v0 = vadd.f32 %v731_v14, %v669_v18  ;;  %v1640_v31 = vpop.permute.xlu0 %626  ;;  %v682_v18 = vsel %vm234_vm11, %v1638_v42, 0.0  ;;  %vm766_vm11 = vcmp.eq.s32.totalorder %v1447_v4, 10 }
 0x1a0   :  { %v733_v21 = vadd.f32 %v732_v0, %v670_v19 }
 0x1a1   :  { %1057 = vperm.xlu1 %1245, %v891_v22  }
 0x1a2   :  { %v734_v57 = vadd.f32 %v733_v21, %v671_v23  ;;  %v899_v21 = vperm.slane %v851_v63, 0 }
 0x1a3   :  { %1061 = vperm.xlu2 %1247, %v892_v25   ;;  %v571_v48 = vpop.permute.xlu1 %570 }
 0x1a4   :  { %v735_v28 = vadd.f32 %v734_v57, %v672_v26  ;;  %1053 = vperm.xlu0 %1246, %v890_v35   ;;  %v678_v60 = vsel %vm230_vm7, %v571_v48, 0.0  ;;  %v686_v26 = vsel %vm238_vm15, %v1606_v43, 0.0  ;;  %vm764_vm7 = vcmp.eq.s32.totalorder %v1447_v4, 8 }
 0x1a5   :  { %v1657_v11 = vpop.permute.xlu2 %929 }
 0x1a6   :  { %v736_v62 = vadd.f32 %v735_v28, %v673_v32  ;;  %v567_v24 = vpop.permute.xlu0 %566  ;;  %v687_v32 = vsel %vm239_vm1, %v1616_v40, 0.0 }
 0x1a7   :  { %v677_v52 = vsel %vm229_vm6, %v567_v24, 0.0  ;;  %vm242_vm6 = vcmp.eq.s32.totalorder %v1473_v33, 61 }
 0x1a8   :  { %v737_v38 = vadd.f32 %v736_v62, %v674_v17  ;;  %v689_v17 = vsel %vm241_vm4, %v1623_v3, 0.0  ;;  %v690_v29 = vsel %vm242_vm6, %v1633_v27, 0.0 }
 0x1a9   :  { %1069 = vperm.xlu1 %1245, %v894_v39  }
 0x1aa   :  { %v738_v45 = vadd.f32 %v737_v38, %v675_v44 }
 0x1ab   :  { %1073 = vperm.xlu2 %1247, %v895_v34   ;;  %v583_v15 = vpop.permute.xlu1 %582 }
 0x1ac   :  { %v739_v49 = vadd.f32 %v738_v45, %v676_v37  ;;  %1065 = vperm.xlu0 %1246, %v893_v46   ;;  %v681_v13 = vsel %vm233_vm10, %v583_v15, 0.0  ;;  %vm244_vm10 = vcmp.eq.s32.totalorder %v1473_v33, 63  ;;  %v691_v37 = vsel %vm243_vm8, %v1604_v30, 0.0 }
 0x1ad   :  { %v1670_v9 = vpop.permute.xlu2 %941  ;;  %v692_v15 = vsel %vm244_vm10, %v1640_v31, 0.0 }
 0x1ae   :  { %v740_v20 = vadd.f32 %v739_v49, %v677_v52  ;;  %v579_v56 = vpop.permute.xlu0 %578  ;;  %v1102_v27 = vsel %vm766_vm11, %v1670_v9, 0.0 }
 0x1af   :  { %v680_v55 = vsel %vm232_vm9, %v579_v56, 0.0  ;;  %vm765_vm9 = vcmp.eq.s32.totalorder %v1447_v4, 9 }
 0x1b0   :  { %v741_v47 = vadd.f32 %v740_v20, %v678_v60  ;;  %v1709_v60 = vld [vmem:[%s1751_s1] sm:$0xff]  ;;  %s1276_s1 = smov [#allocation3]  }
 0x1b1   :  { %1081 = vperm.xlu1 %1245, %v897_v61   ;;  %vm769_vm14 = vcmp.eq.s32.totalorder %v1709_v60, 13  ;;  %vm770_vm15 = vcmp.eq.s32.totalorder %v1709_v60, 14  ;;  %vm772_vm1 = vcmp.eq.s32.totalorder %v1709_v60, 16  ;;  %vm774_vm3 = vcmp.eq.s32.totalorder %v1709_v60, 18  ;;  %s1194_s15 = sshll.u32 %s1276_s1, 4  ;;  %s1195_s15 = int_to_ptr.vmem [resolvable:$true] %s1194_s15 }
 0x1b2   :  { %v742_v10 = vadd.f32 %v741_v47, %v679_v54  ;;  %vm775_vm4 = vcmp.eq.s32.totalorder %v1709_v60, 19  ;;  %vm777_vm6 = vcmp.eq.s32.totalorder %v1709_v60, 21  ;;  %vm779_vm8 = vcmp.eq.s32.totalorder %v1709_v60, 23 }
 0x1b3   :  { %1085 = vperm.xlu2 %1247, %v898_v6   ;;  %v595_v12 = vpop.permute.xlu1 %594  ;;  %vm781_vm10 = vcmp.eq.s32.totalorder %v1709_v60, 25  ;;  %vm782_vm11 = vcmp.eq.s32.totalorder %v1709_v60, 26 }
 0x1b4   :  { %v743_v7 = vadd.f32 %v742_v10, %v680_v55  ;;  %1077 = vperm.xlu0 %1246, %v896_v16   ;;  %v684_v22 = vsel %vm236_vm13, %v595_v12, 0.0  ;;  %vm768_vm13 = vcmp.eq.s32.totalorder %v1447_v4, 12 }
 0x1b5   :  { %v954_v23 = vpop.permute.xlu2 %953 }
 0x1b6   :  { %v744_v14 = vadd.f32 %v743_v7, %v681_v13  ;;  %v591_v2 = vpop.permute.xlu0 %590  ;;  %v1105_v61 = vsel %vm769_vm14, %v954_v23, 0.0  ;;  %vm785_vm14 = vcmp.eq.s32.totalorder %v1709_v60, 29 }
 0x1b7   :  { %v683_v8 = vsel %vm235_vm12, %v591_v2, 0.0  ;;  %vm767_vm12 = vcmp.eq.s32.totalorder %v1447_v4, 11 }
 0x1b8   :  { %v745_v0 = vadd.f32 %v744_v14, %v682_v18 }
 0x1ba   :  { %v746_v19 = vadd.f32 %v745_v0, %v683_v8 }
 0x1bb   :  { %v926_v25 = vpop.permute.xlu1 %925 }
 0x1bc   :  { %v747_v57 = vadd.f32 %v746_v19, %v684_v22  ;;  %1089 = vperm.xlu0 %1246, %v899_v21   ;;  %v1098_v62 = vsel %vm762_vm2, %v926_v25, 0.0  ;;  %vm773_vm2 = vcmp.eq.s32.totalorder %v1709_v60, 17 }
 0x1bd   :  { %v966_v40 = vpop.permute.xlu2 %965 }
 0x1be   :  { %v748_v42 = vadd.f32 %v747_v57, %v685_v59  ;;  %v922_v35 = vpop.permute.xlu0 %921  ;;  %v1108_v12 = vsel %vm772_vm1, %v966_v40, 0.0  ;;  %vm788_vm1 = vcmp.eq.s32.totalorder %v1709_v60, 32 }
 0x1bf   :  { %v1097_v28 = vsel %vm761_vm0, %v922_v35, 0.0  ;;  %vm771_vm0 = vcmp.eq.s32.totalorder %v1709_v60, 15 }
 0x1c0   :  { %v749_v48 = vadd.f32 %v748_v42, %v686_v26  ;;  %v1144_v1 = vadd.f32 %v1479_v41, %v1097_v28  ;;  %v1099_v41 = vsel %vm763_vm5, %v1657_v11, 0.0  ;;  %vm776_vm5 = vcmp.eq.s32.totalorder %v1709_v60, 20 }
 0x1c2   :  { %v750_v5 = vadd.f32 %v749_v48, %v687_v32  ;;  %v1145_v24 = vadd.f32 %v1144_v1, %v1098_v62 }
 0x1c3   :  { %v938_v36 = vpop.permute.xlu1 %937 }
 0x1c4   :  { %v751_v43 = vadd.f32 %v750_v5, %v688_v58  ;;  %v1146_v38 = vadd.f32 %v1145_v24, %v1099_v41  ;;  %v1101_v3 = vsel %vm765_vm9, %v938_v36, 0.0  ;;  %vm780_vm9 = vcmp.eq.s32.totalorder %v1709_v60, 24 }
 0x1c5   :  { %v978_v30 = vpop.permute.xlu2 %977 }
 0x1c6   :  { %v934_v39 = vpop.permute.xlu0 %933  ;;  %v752_v44 = vadd.f32 %v751_v43, %v689_v17  ;;  %v1111_v21 = vsel %vm775_vm4, %v978_v30, 0.0  ;;  %vm791_vm4 = vcmp.eq.s32.totalorder %v1709_v60, 35 }
 0x1c7   :  { %v1100_v45 = vsel %vm764_vm7, %v934_v39, 0.0  ;;  %vm778_vm7 = vcmp.eq.s32.totalorder %v1709_v60, 22 }
 0x1c8   :  { %v1147_v34 = vadd.f32 %v1146_v38, %v1100_v45  ;;  %v753_v46 = vadd.f32 %v752_v44, %v690_v29 }
 0x1ca   :  { %v1148_v11 = vadd.f32 %v1147_v34, %v1101_v3  ;;  %v754_v49 = vadd.f32 %v753_v46, %v691_v37 }
 0x1cb   :  { %v950_v50 = vpop.permute.xlu1 %949 }
 0x1cc   :  { %v1702_v52 = vadd.f32 %v754_v49, %v692_v15  ;;  %v1149_v33 = vadd.f32 %v1148_v11, %v1102_v27  ;;  %v1104_v51 = vsel %vm768_vm13, %v950_v50, 0.0  ;;  %vm784_vm13 = vcmp.eq.s32.totalorder %v1709_v60, 28 }
 0x1cd   :  { %v990_v16 = vpop.permute.xlu2 %989 }
 0x1ce   :  { %v946_v20 = vpop.permute.xlu0 %945  ;;  %v1114_v26 = vsel %vm778_vm7, %v990_v16, 0.0  ;;  %vm794_vm7 = vcmp.eq.s32.totalorder %v1709_v60, 38 }
 0x1cf   :  { %v1103_v56 = vsel %vm767_vm12, %v946_v20, 0.0  ;;  %vm783_vm12 = vcmp.eq.s32.totalorder %v1709_v60, 27 }
 0x1d0   :  { %v1150_v53 = vadd.f32 %v1149_v33, %v1103_v56 }
 0x1d2   :  { %v1151_v31 = vadd.f32 %v1150_v53, %v1104_v51 }
 0x1d3   :  { %v962_v47 = vpop.permute.xlu1 %961 }
 0x1d4   :  { %v1152_v4 = vadd.f32 %v1151_v31, %v1105_v61  ;;  %v1107_v6 = vsel %vm771_vm0, %v962_v47, 0.0  ;;  %vm787_vm0 = vcmp.eq.s32.totalorder %v1709_v60, 31 }
 0x1d5   :  { %v1002_v8 = vpop.permute.xlu2 %1001 }
 0x1d6   :  { %v958_v54 = vpop.permute.xlu0 %957  ;;  %v1117_v43 = vsel %vm781_vm10, %v1002_v8, 0.0  ;;  %vm797_vm10 = vcmp.eq.s32.totalorder %v1709_v60, 41 }
 0x1d7   :  { %v1106_v9 = vsel %vm770_vm15, %v958_v54, 0.0  ;;  %vm786_vm15 = vcmp.eq.s32.totalorder %v1709_v60, 30 }
 0x1d8   :  { %v1153_v10 = vadd.f32 %v1152_v4, %v1106_v9 }
 0x1da   :  { %v1154_v55 = vadd.f32 %v1153_v10, %v1107_v6 }
 0x1db   :  { %v974_v7 = vpop.permute.xlu1 %973 }
 0x1dc   :  { %v1155_v13 = vadd.f32 %v1154_v55, %v1108_v12  ;;  %v1110_v18 = vsel %vm774_vm3, %v974_v7, 0.0  ;;  %vm790_vm3 = vcmp.eq.s32.totalorder %v1709_v60, 34 }
 0x1dd   :  { %v1014_v28 = vpop.permute.xlu2 %1013 }
 0x1de   :  { %v970_v14 = vpop.permute.xlu0 %969  ;;  %v1120_v45 = vsel %vm784_vm13, %v1014_v28, 0.0  ;;  %vm800_vm13 = vcmp.eq.s32.totalorder %v1709_v60, 44 }
 0x1df   :  { %v1109_v2 = vsel %vm773_vm2, %v970_v14, 0.0  ;;  %vm789_vm2 = vcmp.eq.s32.totalorder %v1709_v60, 33 }
 0x1e0   :  { %v1156_v63 = vadd.f32 %v1155_v13, %v1109_v2 }
 0x1e2   :  { %v1157_v0 = vadd.f32 %v1156_v63, %v1110_v18 }
 0x1e3   :  { %v986_v19 = vpop.permute.xlu1 %985 }
 0x1e4   :  { %v1158_v22 = vadd.f32 %v1157_v0, %v1111_v21  ;;  %v1113_v59 = vsel %vm777_vm6, %v986_v19, 0.0  ;;  %vm793_vm6 = vcmp.eq.s32.totalorder %v1709_v60, 37 }
 0x1e5   :  { %v1026_v40 = vpop.permute.xlu2 %1025 }
 0x1e6   :  { %v982_v23 = vpop.permute.xlu0 %981  ;;  %v1123_v27 = vsel %vm787_vm0, %v1026_v40, 0.0  ;;  %vm803_vm0 = vcmp.eq.s32.totalorder %v1709_v60, 47 }
 0x1e7   :  { %v1112_v57 = vsel %vm776_vm5, %v982_v23, 0.0  ;;  %vm792_vm5 = vcmp.eq.s32.totalorder %v1709_v60, 36 }
 0x1e8   :  { %v1159_v25 = vadd.f32 %v1158_v22, %v1112_v57 }
 0x1ea   :  { %v1160_v42 = vadd.f32 %v1159_v25, %v1113_v59 }
 0x1eb   :  { %v998_v35 = vpop.permute.xlu1 %997 }
 0x1ec   :  { %v1161_v48 = vadd.f32 %v1160_v42, %v1114_v26  ;;  %v1116_v5 = vsel %vm780_vm9, %v998_v35, 0.0  ;;  %vm796_vm9 = vcmp.eq.s32.totalorder %v1709_v60, 40 }
 0x1ed   :  { %v1038_v49 = vpop.permute.xlu2 %1037 }
 0x1ee   :  { %v994_v1 = vpop.permute.xlu0 %993  ;;  %v1126_v61 = vsel %vm790_vm3, %v1038_v49, 0.0 }
 0x1ef   :  { %v1115_v32 = vsel %vm779_vm8, %v994_v1, 0.0  ;;  %vm795_vm8 = vcmp.eq.s32.totalorder %v1709_v60, 39 }
 0x1f0   :  { %v1162_v62 = vadd.f32 %v1161_v48, %v1115_v32 }
 0x1f2   :  { %v1163_v24 = vadd.f32 %v1162_v62, %v1116_v5 }
 0x1f3   :  { %v1010_v58 = vpop.permute.xlu1 %1009 }
 0x1f4   :  { %v1164_v36 = vadd.f32 %v1163_v24, %v1117_v43  ;;  %v1119_v39 = vsel %vm783_vm12, %v1010_v58, 0.0  ;;  %vm799_vm12 = vcmp.eq.s32.totalorder %v1709_v60, 43 }
 0x1f5   :  { %v1050_v31 = vpop.permute.xlu2 %1049 }
 0x1f6   :  { %v1006_v17 = vpop.permute.xlu0 %1005  ;;  %v1129_v7 = vsel %vm793_vm6, %v1050_v31, 0.0 }
 0x1f7   :  { %v1118_v41 = vsel %vm782_vm11, %v1006_v17, 0.0  ;;  %vm798_vm11 = vcmp.eq.s32.totalorder %v1709_v60, 42 }
 0x1f8   :  { %v1165_v38 = vadd.f32 %v1164_v36, %v1118_v41 }
 0x1fa   :  { %v1166_v44 = vadd.f32 %v1165_v38, %v1119_v39 }
 0x1fb   :  { %v1022_v29 = vpop.permute.xlu1 %1021 }
 0x1fc   :  { %v1167_v34 = vadd.f32 %v1166_v44, %v1120_v45  ;;  %v1122_v11 = vsel %vm786_vm15, %v1022_v29, 0.0  ;;  %vm802_vm15 = vcmp.eq.s32.totalorder %v1709_v60, 46 }
 0x1fd   :  { %v1062_v12 = vpop.permute.xlu2 %1061 }
 0x1fe   :  { %v1018_v46 = vpop.permute.xlu0 %1017  ;;  %v1132_v19 = vsel %vm796_vm9, %v1062_v12, 0.0 }
 0x1ff   :  { %v1121_v37 = vsel %vm785_vm14, %v1018_v46, 0.0  ;;  %vm801_vm14 = vcmp.eq.s32.totalorder %v1709_v60, 45 }
 0x200   :  { %v1168_v3 = vadd.f32 %v1167_v34, %v1121_v37 }
 0x202   :  { %v1169_v15 = vadd.f32 %v1168_v3, %v1122_v11 }
 0x203   :  { %v1034_v50 = vpop.permute.xlu1 %1033 }
 0x204   :  { %v1170_v33 = vadd.f32 %v1169_v15, %v1123_v27  ;;  %v1125_v53 = vsel %vm789_vm2, %v1034_v50, 0.0 }
 0x205   :  { %v1074_v57 = vpop.permute.xlu2 %1073 }
 0x206   :  { %v1030_v20 = vpop.permute.xlu0 %1029  ;;  %v1135_v35 = vsel %vm799_vm12, %v1074_v57, 0.0 }
 0x207   :  { %v1124_v56 = vsel %vm788_vm1, %v1030_v20, 0.0 }
 0x208   :  { %v1171_v30 = vadd.f32 %v1170_v33, %v1124_v56 }
 0x20a   :  { %v1172_v51 = vadd.f32 %v1171_v30, %v1125_v53 }
 0x20b   :  { %v1046_v47 = vpop.permute.xlu1 %1045 }
 0x20c   :  { %v1173_v4 = vadd.f32 %v1172_v51, %v1126_v61  ;;  %v1128_v6 = vsel %vm792_vm5, %v1046_v47, 0.0 }
 0x20d   :  { %v1086_v5 = vpop.permute.xlu2 %1085 }
 0x20e   :  { %v1042_v54 = vpop.permute.xlu0 %1041  ;;  %v1138_v58 = vsel %vm802_vm15, %v1086_v5, 0.0 }
 0x20f   :  { %v1127_v9 = vsel %vm791_vm4, %v1042_v54, 0.0 }
 0x210   :  { %v1174_v10 = vadd.f32 %v1173_v4, %v1127_v9 }
 0x212   :  { %v1175_v16 = vadd.f32 %v1174_v10, %v1128_v6 }
 0x213   :  { %v1058_v55 = vpop.permute.xlu1 %1057 }
 0x214   :  { %v1176_v13 = vadd.f32 %v1175_v16, %v1129_v7  ;;  %v1131_v18 = vsel %vm795_vm8, %v1058_v55, 0.0 }
 0x216   :  { %v1054_v14 = vpop.permute.xlu0 %1053 }
 0x217   :  { %v1130_v2 = vsel %vm794_vm7, %v1054_v14, 0.0 }
 0x218   :  { %v1177_v63 = vadd.f32 %v1176_v13, %v1130_v2 }
 0x21a   :  { %v1178_v0 = vadd.f32 %v1177_v63, %v1131_v18 }
 0x21b   :  { %v1070_v8 = vpop.permute.xlu1 %1069 }
 0x21c   :  { %v1179_v21 = vadd.f32 %v1178_v0, %v1132_v19  ;;  %v1134_v59 = vsel %vm798_vm11, %v1070_v8, 0.0 }
 0x21e   :  { %v1066_v22 = vpop.permute.xlu0 %1065 }
 0x21f   :  { %v1133_v23 = vsel %vm797_vm10, %v1066_v22, 0.0 }
 0x220   :  { %v1180_v25 = vadd.f32 %v1179_v21, %v1133_v23 }
 0x222   :  { %v1181_v42 = vadd.f32 %v1180_v25, %v1134_v59 }
 0x223   :  { %v1082_v26 = vpop.permute.xlu1 %1081 }
 0x224   :  { %v1182_v28 = vadd.f32 %v1181_v42, %v1135_v35  ;;  %v1137_v62 = vsel %vm801_vm14, %v1082_v26, 0.0 }
 0x226   :  { %v1078_v48 = vpop.permute.xlu0 %1077 }
 0x227   :  { %v1136_v1 = vsel %vm800_vm13, %v1078_v48, 0.0 }
 0x228   :  { %v1183_v32 = vadd.f32 %v1182_v28, %v1136_v1 }
 0x22a   :  { %v1184_v24 = vadd.f32 %v1183_v32, %v1137_v62 }
 0x22c   :  { %v1185_v43 = vadd.f32 %v1184_v24, %v1138_v58 }
 0x22e   :  { %v1090_v36 = vpop.permute.xlu0 %1089 }
 0x22f   :  { %v1139_v17 = vsel %vm803_vm0, %v1090_v36, 0.0 }
 0x230   :  { %v1186_v41 = vadd.f32 %v1185_v43, %v1139_v17 }
 0x232   :  { %v1187_v40 = vadd.f32 %v1186_v41, %v1702_v52 }
 0x234   :  { %1188 = vst [vmem:[#allocation3] sm:$0xff] %v1187_v40 }
 0x235   :  { %1199 = dma.vmem_to_hbm [thread:$0]  %s1195_s15, 128, %s1197_s18, [#allocation4]  }
 0x236   :  { %1273 = dma.done.wait [#allocation4], 128  }
 0x237   :  { %1274 = vsyncadd [#allocation4], 4294967168 }
 0x238   :  { %1204 = vsyncpa [#allocation4], 1 }

</bundles_post_ra>
